<compile_context>
chip_gen: v7x
topology: tpu7x:2x2x1
jax: 0.10.0
libtpu: 0.0.40
codegen_flags: <defaults>
</compile_context>

<pallas_src>
import functools

import jax
import jax.numpy as jnp
from jax import lax
from jax.experimental import pallas as pl
from jax.experimental.pallas import tpu as pltpu

_LANE = 128      # vreg lane width
_SUBLANE = 8     # f32 sublane count (activations / intermediates are f32)


def _round_up(v, m):
    return -(-v // m) * m


def _resident_spec(shape):
    """BlockSpec for a weight that is identical at every grid step.

    Constant index_map keeps the block VMEM-resident across the grid;
    Buffered(1) avoids allocating a useless second pipeline buffer for it."""
    try:
        return pl.BlockSpec(shape, lambda i: (0,) * len(shape),
                            pipeline_mode=pl.Buffered(1))
    except TypeError:   # older jax without pipeline_mode on BlockSpec
        return pl.BlockSpec(shape, lambda i: (0,) * len(shape))


def _fused_net_kernel(x_ref, *refs, layer_modes, n_true, out_dim, compute_dtype):
    """refs = [per-layer weight refs ..., o_ref].

    layer_modes: tuple of ("concat", p_out) or ("split", p_out) per layer.
      "concat": refs are ([W1 | W2/N] (prev, 2*p_out), bias (1, p_out))
      "split" : refs are (W1 (prev, p_out), W2/N (prev, p_out), bias (1, p_out))
    All accumulators / activations are f32; only matmul operands are cast to
    `compute_dtype` (weights were pre-cast at trace time).
    """
    o_ref = refs[-1]
    wrefs = refs[:-1]

    bt, n_pad, d_in = x_ref.shape
    rows = bt * n_pad
    n_layers = len(layer_modes)

    # Free shape_cast: n_pad is a multiple of the f32 sublane count.
    h = x_ref[...].astype(jnp.float32).reshape(rows, d_in)

    idx = 0
    for li, (mode, p_out) in enumerate(layer_modes):
        hc = h if h.dtype == compute_dtype else h.astype(compute_dtype)

        if mode == "concat":
            wcat = wrefs[idx][...]           # (prev, 2*p_out), pre-cast
            bias = wrefs[idx + 1][...]       # (1, p_out), f32 (b1 + b2/N)
            idx += 2
            z = jnp.dot(hc, wcat, preferred_element_type=jnp.float32)
            z1 = z[:, :p_out]                                 # lane-aligned split
            z2g = jnp.sum(z[:, p_out:].reshape(bt, n_pad, p_out), axis=1)
        else:
            w1 = wrefs[idx][...]             # (prev, p_out), pre-cast
            w2n = wrefs[idx + 1][...]        # (prev, p_out) = W2 / N, pre-cast
            bias = wrefs[idx + 2][...]       # (1, p_out), f32
            idx += 3
            z1 = jnp.dot(hc, w1, preferred_element_type=jnp.float32)
            hs = jnp.sum(h.reshape(bt, n_pad, -1), axis=1)    # (bt, prev) f32
            z2g = jnp.dot(hs.astype(compute_dtype), w2n,
                          preferred_element_type=jnp.float32)  # (bt, p_out)

        # per-set term broadcast onto every row of the set + folded bias
        y = z1.reshape(bt, n_pad, p_out) + z2g[:, None, :] + bias

        if li < n_layers - 1:
            y = jnp.tanh(y)                                   # hidden activation (f32)
            if n_pad != n_true:
                # Zero padded set rows so they don't leak into the next
                # layer's per-set sum (only traced when N needed padding).
                keep = lax.broadcasted_iota(jnp.int32, y.shape, 1) < n_true
                y = jnp.where(keep, y, 0.0)
            h = y.reshape(rows, p_out)
        else:
            o_ref[...] = y[..., :out_dim].astype(o_ref.dtype)

    assert idx == len(wrefs)


def _choose_batch_tile(B, n_pad, bytes_per_batch, *, target_rows=512,
                       min_split_rows=256, vmem_budget=24 << 20):
    """>= ~512 MXU rows per step (amortize ~0.35us/step overhead), capped by a
    VMEM budget (v7x has only 64 MiB / 32 MiB scoped). Only split into >= 2
    parallel grid steps (v7x dual TensorCore) when each step keeps >= 256
    rows; on a single TC extra steps are pure overhead."""
    bt = min(B, max(1, _round_up(target_rows, n_pad) // n_pad))
    bt = max(1, min(bt, vmem_budget // max(bytes_per_batch, 1)))
    if bt >= B and B > 1:
        half = (B + 1) // 2
        if half * n_pad >= min_split_rows:
            bt = half
    return bt


def equivariant_net(x, params, *, batch_tile=None, compute_dtype=jnp.float32,
                    concat_width_limit=2 * _LANE):
    """Fused EquivariantNet forward pass (mask=None).

    x: (B, N, in_dim); params: list of (w1, b1, w2, b2) with weights
    pre-transposed to (d_in, d_out) and biases of shape (1, d_out).
    Returns (B, N, out_dim). For production on v6e/v7x pass
    compute_dtype=jnp.bfloat16 (matmul operands only; accum/tanh stay f32).
    """
    B, N, in_dim = x.shape
    out_dim = params[-1][0].shape[1]
    x_dtype = x.dtype
    itemsize = x_dtype.itemsize
    n_layers = len(params)

    # ---- trace-time weight prep: fold 1/N + biases, pad every layer output
    # ---- width to a 128-lane boundary, cast matmul operands once. ---------
    layer_modes = []
    flat_w = []
    flops_per_row = 0
    trans_per_row = 0
    prev = in_dim
    for li, (w1, b1, w2, b2) in enumerate(params):
        d_out = w1.shape[1]
        p_out = _round_up(d_out, _LANE)
        pad_in = prev - w1.shape[0]          # 0 for layer 0, lane-pad after
        w1p = jnp.pad(w1, ((0, pad_in), (0, p_out - d_out))).astype(compute_dtype)
        w2p = jnp.pad(w2 / N, ((0, pad_in), (0, p_out - d_out))).astype(compute_dtype)
        biasp = jnp.pad(b1 + b2 / N, ((0, 0), (0, p_out - d_out))).astype(jnp.float32)
        if 2 * p_out <= concat_width_limit:
            # Both halves fit one MXU result pass -> single merged matmul.
            layer_modes.append(("concat", p_out))
            flat_w.extend([jnp.concatenate([w1p, w2p], axis=1), biasp])
            flops_per_row += 2 * prev * 2 * p_out
        else:
            # Too wide for one pass: pre-reduce over N (cheap XLU reduce) and
            # do a small (bt-row) matmul for the W2 path instead.
            layer_modes.append(("split", p_out))
            flat_w.extend([w1p, w2p, biasp])
            flops_per_row += 2 * prev * p_out
        if li < n_layers - 1:
            trans_per_row += p_out
        prev = p_out
    layer_modes = tuple(layer_modes)
    w_specs = [_resident_spec(w.shape) for w in flat_w]

    # ---- tiling: pad N to sublane multiple, choose batch tile, pad B ------
    n_pad = _round_up(N, _SUBLANE)
    lane_widths = [2 * p if m == "concat" else p for m, p in layer_modes]
    max_w = max(lane_widths + [in_dim, out_dim])
    bytes_per_batch = n_pad * (2 * (in_dim + out_dim) * itemsize + 6 * max_w * 4)
    if batch_tile is not None:
        bt = max(1, min(int(batch_tile), B))
    else:
        bt = _choose_batch_tile(B, n_pad, bytes_per_batch)
    steps = pl.cdiv(B, bt)
    b_pad = steps * bt
    if (b_pad, n_pad) != (B, N):
        x = jnp.pad(x, ((0, b_pad - B), (0, n_pad - N), (0, 0)))

    in_specs = [pl.BlockSpec((bt, n_pad, in_dim), lambda i: (i, 0, 0))] + w_specs
    out_specs = pl.BlockSpec((bt, n_pad, out_dim), lambda i: (i, 0, 0))

    # ---- explicit VMEM budget (valid on v5e/v6e/v7x) ----------------------
    weight_bytes = sum(int(w.size) * w.dtype.itemsize for w in flat_w)
    vmem_need = (2 * bt * n_pad * (in_dim + out_dim) * itemsize   # dbl-buf I/O
                 + 2 * weight_bytes                                # weights
                 + 6 * bt * n_pad * max_w * 4)                     # f32 temps
    vmem_limit = int(min(max(vmem_need + (8 << 20), 32 << 20), 64 << 20))

    kernel = functools.partial(
        _fused_net_kernel, layer_modes=layer_modes, n_true=N,
        out_dim=out_dim, compute_dtype=compute_dtype)

    out = pl.pallas_call(
        kernel,
        out_shape=jax.ShapeDtypeStruct((b_pad, n_pad, out_dim), x_dtype),
        grid_spec=pltpu.PrefetchScalarGridSpec(
            num_scalar_prefetch=0,
            grid=(steps,),
            in_specs=in_specs,
            out_specs=out_specs),
        compiler_params=pltpu.CompilerParams(
            dimension_semantics=("parallel",),
            vmem_limit_bytes=vmem_limit),
        cost_estimate=pl.CostEstimate(
            flops=int(b_pad * n_pad * flops_per_row),
            transcendentals=int(b_pad * n_pad * trans_per_row),
            bytes_accessed=int(b_pad * n_pad * (in_dim + out_dim) * itemsize
                               + weight_bytes)),
    )(x, *flat_w)

    if (b_pad, n_pad) != (B, N):
        out = out[:B, :N]
    return out


def init_equivariant_net_params(key, in_dim, hidden_dims, out_dim):
    """Deterministic parameter init. Weights stored pre-transposed: (d_in, d_out)."""
    dims = [in_dim] + list(hidden_dims) + [out_dim]
    params = []
    for d_in, d_out in zip(dims[:-1], dims[1:]):
        key, k1, k2, k3, k4 = jax.random.split(key, 5)
        scale = 1.0 / jnp.sqrt(d_in)
        w1 = jax.random.uniform(k1, (d_in, d_out), jnp.float32, -scale, scale)
        b1 = jax.random.uniform(k2, (1, d_out), jnp.float32, -scale, scale)
        w2 = jax.random.uniform(k3, (d_in, d_out), jnp.float32, -scale, scale)
        b2 = jax.random.uniform(k4, (1, d_out), jnp.float32, -scale, scale)
        params.append((w1, b1, w2, b2))
    return params


def equivariant_net_ref(x, params):
    """Pure-JAX reference matching the PyTorch forward (mask=None)."""
    n_layers = len(params)
    for i, (w1, b1, w2, b2) in enumerate(params):
        N = x.shape[-2]
        y1 = x @ w1 + b1
        y2 = (jnp.sum(x, axis=-2, keepdims=True) @ w2 + b2) / N
        x = y1 + y2
        if i < n_layers - 1:
            x = jnp.tanh(x)
    return x


if __name__ == "__main__":
    key = jax.random.PRNGKey(0)
    B, N, in_dim = 2, 8, 4
    hidden_dims = [32, 32]
    out_dim = 4

    key, kx, kp = jax.random.split(key, 3)
    x = jax.random.normal(kx, (B, N, in_dim), jnp.float32)
    params = init_equivariant_net_params(kp, in_dim, hidden_dims, out_dim)

    # f32 compute path so the exact 1e-5 check against the reference holds.
    out = equivariant_net(x, params, compute_dtype=jnp.float32)
    out = jax.block_until_ready(out)

    ref = equivariant_net_ref(x, params)
    assert out.shape == (B, N, out_dim)
    assert jnp.allclose(out, ref, atol=1e-5, rtol=1e-5), "mismatch vs reference"

    print("KERNEL_OK")
</pallas_src>

<mosaic_0001>
module attributes {stable_mosaic.version = 11 : i64} {
  func.func @_fused_net_kernel(%arg0: i32, %arg1: memref<2x8x4xf32, #tpu.memory_space<vmem>>, %arg2: memref<4x256xf32, #tpu.memory_space<vmem>>, %arg3: memref<1x128xf32, #tpu.memory_space<vmem>>, %arg4: memref<128x256xf32, #tpu.memory_space<vmem>>, %arg5: memref<1x128xf32, #tpu.memory_space<vmem>>, %arg6: memref<128x256xf32, #tpu.memory_space<vmem>>, %arg7: memref<1x128xf32, #tpu.memory_space<vmem>>, %arg8: memref<2x8x4xf32, #tpu.memory_space<vmem>>) attributes {dimension_semantics = [#tpu.dimension_semantics<parallel>], iteration_bounds = array<i64: 1>, scalar_prefetch = 0 : i64, scratch_operands = 0 : i64, tpu.core_type = #tpu.core_type<tc>, window_params = [{transform_indices = @transform_0, window_bounds = array<i64: 2, 8, 4>}, {pipeline_mode = #tpu.pipeline_mode<synchronous>, transform_indices = @transform_1, window_bounds = array<i64: 4, 256>}, {pipeline_mode = #tpu.pipeline_mode<synchronous>, transform_indices = @transform_2, window_bounds = array<i64: 1, 128>}, {pipeline_mode = #tpu.pipeline_mode<synchronous>, transform_indices = @transform_3, window_bounds = array<i64: 128, 256>}, {pipeline_mode = #tpu.pipeline_mode<synchronous>, transform_indices = @transform_4, window_bounds = array<i64: 1, 128>}, {pipeline_mode = #tpu.pipeline_mode<synchronous>, transform_indices = @transform_5, window_bounds = array<i64: 128, 256>}, {pipeline_mode = #tpu.pipeline_mode<synchronous>, transform_indices = @transform_6, window_bounds = array<i64: 1, 128>}, {transform_indices = @transform_7, window_bounds = array<i64: 2, 8, 4>}]} {
    %c0 = arith.constant 0 : index
    %c0_0 = arith.constant 0 : index
    %c0_1 = arith.constant 0 : index
    %0 = vector.load %arg1[%c0, %c0_0, %c0_1] : memref<2x8x4xf32, #tpu.memory_space<vmem>>, vector<2x8x4xf32>
    %1 = vector.shape_cast %0 : vector<2x8x4xf32> to vector<16x4xf32>
    %c0_2 = arith.constant 0 : index
    %c0_3 = arith.constant 0 : index
    %2 = vector.load %arg2[%c0_2, %c0_3] : memref<4x256xf32, #tpu.memory_space<vmem>>, vector<4x256xf32>
    %c0_4 = arith.constant 0 : index
    %c0_5 = arith.constant 0 : index
    %3 = vector.load %arg3[%c0_4, %c0_5] : memref<1x128xf32, #tpu.memory_space<vmem>>, vector<1x128xf32>
    %cst = arith.constant dense<0.000000e+00> : vector<16x256xf32>
    %4 = tpu.matmul %1, %2, %cst {dimension_numbers = #tpu.dot_dimension_numbers<[1], [0], [0], [1], [0, 0, 1, 1], [], []>} : vector<16x4xf32>, vector<4x256xf32>, vector<16x256xf32> -> vector<16x256xf32>
    %5 = vector.extract_strided_slice %4 {offsets = [0, 0], sizes = [16, 128], strides = [1, 1]} : vector<16x256xf32> to vector<16x128xf32>
    %6 = vector.extract_strided_slice %4 {offsets = [0, 128], sizes = [16, 128], strides = [1, 1]} : vector<16x256xf32> to vector<16x128xf32>
    %7 = vector.shape_cast %6 : vector<16x128xf32> to vector<2x8x128xf32>
    %cst_6 = arith.constant dense<0.000000e+00> : vector<2x128xf32>
    %8 = vector.multi_reduction <add>, %7, %cst_6 [1] : vector<2x8x128xf32> to vector<2x128xf32>
    %9 = vector.shape_cast %5 : vector<16x128xf32> to vector<2x8x128xf32>
    %10 = vector.shape_cast %8 : vector<2x128xf32> to vector<2x1x128xf32>
    %11 = vector.broadcast %10 : vector<2x1x128xf32> to vector<2x8x128xf32>
    %12 = arith.addf %9, %11 : vector<2x8x128xf32>
    %13 = vector.shape_cast %3 : vector<1x128xf32> to vector<1x1x128xf32>
    %14 = vector.broadcast %13 : vector<1x1x128xf32> to vector<2x8x128xf32>
    %15 = arith.addf %12, %14 : vector<2x8x128xf32>
    %16 = math.tanh %15 : vector<2x8x128xf32>
    %17 = vector.shape_cast %16 : vector<2x8x128xf32> to vector<16x128xf32>
    %c0_7 = arith.constant 0 : index
    %c0_8 = arith.constant 0 : index
    %18 = vector.load %arg4[%c0_7, %c0_8] : memref<128x256xf32, #tpu.memory_space<vmem>>, vector<128x256xf32>
    %c0_9 = arith.constant 0 : index
    %c0_10 = arith.constant 0 : index
    %19 = vector.load %arg5[%c0_9, %c0_10] : memref<1x128xf32, #tpu.memory_space<vmem>>, vector<1x128xf32>
    %cst_11 = arith.constant dense<0.000000e+00> : vector<16x256xf32>
    %20 = tpu.matmul %17, %18, %cst_11 {dimension_numbers = #tpu.dot_dimension_numbers<[1], [0], [0], [1], [0, 0, 1, 1], [], []>} : vector<16x128xf32>, vector<128x256xf32>, vector<16x256xf32> -> vector<16x256xf32>
    %21 = vector.extract_strided_slice %20 {offsets = [0, 0], sizes = [16, 128], strides = [1, 1]} : vector<16x256xf32> to vector<16x128xf32>
    %22 = vector.extract_strided_slice %20 {offsets = [0, 128], sizes = [16, 128], strides = [1, 1]} : vector<16x256xf32> to vector<16x128xf32>
    %23 = vector.shape_cast %22 : vector<16x128xf32> to vector<2x8x128xf32>
    %cst_12 = arith.constant dense<0.000000e+00> : vector<2x128xf32>
    %24 = vector.multi_reduction <add>, %23, %cst_12 [1] : vector<2x8x128xf32> to vector<2x128xf32>
    %25 = vector.shape_cast %21 : vector<16x128xf32> to vector<2x8x128xf32>
    %26 = vector.shape_cast %24 : vector<2x128xf32> to vector<2x1x128xf32>
    %27 = vector.broadcast %26 : vector<2x1x128xf32> to vector<2x8x128xf32>
    %28 = arith.addf %25, %27 : vector<2x8x128xf32>
    %29 = vector.shape_cast %19 : vector<1x128xf32> to vector<1x1x128xf32>
    %30 = vector.broadcast %29 : vector<1x1x128xf32> to vector<2x8x128xf32>
    %31 = arith.addf %28, %30 : vector<2x8x128xf32>
    %32 = math.tanh %31 : vector<2x8x128xf32>
    %33 = vector.shape_cast %32 : vector<2x8x128xf32> to vector<16x128xf32>
    %c0_13 = arith.constant 0 : index
    %c0_14 = arith.constant 0 : index
    %34 = vector.load %arg6[%c0_13, %c0_14] : memref<128x256xf32, #tpu.memory_space<vmem>>, vector<128x256xf32>
    %c0_15 = arith.constant 0 : index
    %c0_16 = arith.constant 0 : index
    %35 = vector.load %arg7[%c0_15, %c0_16] : memref<1x128xf32, #tpu.memory_space<vmem>>, vector<1x128xf32>
    %cst_17 = arith.constant dense<0.000000e+00> : vector<16x256xf32>
    %36 = tpu.matmul %33, %34, %cst_17 {dimension_numbers = #tpu.dot_dimension_numbers<[1], [0], [0], [1], [0, 0, 1, 1], [], []>} : vector<16x128xf32>, vector<128x256xf32>, vector<16x256xf32> -> vector<16x256xf32>
    %37 = vector.extract_strided_slice %36 {offsets = [0, 0], sizes = [16, 128], strides = [1, 1]} : vector<16x256xf32> to vector<16x128xf32>
    %38 = vector.extract_strided_slice %36 {offsets = [0, 128], sizes = [16, 128], strides = [1, 1]} : vector<16x256xf32> to vector<16x128xf32>
    %39 = vector.shape_cast %38 : vector<16x128xf32> to vector<2x8x128xf32>
    %cst_18 = arith.constant dense<0.000000e+00> : vector<2x128xf32>
    %40 = vector.multi_reduction <add>, %39, %cst_18 [1] : vector<2x8x128xf32> to vector<2x128xf32>
    %41 = vector.shape_cast %37 : vector<16x128xf32> to vector<2x8x128xf32>
    %42 = vector.shape_cast %40 : vector<2x128xf32> to vector<2x1x128xf32>
    %43 = vector.broadcast %42 : vector<2x1x128xf32> to vector<2x8x128xf32>
    %44 = arith.addf %41, %43 : vector<2x8x128xf32>
    %45 = vector.shape_cast %35 : vector<1x128xf32> to vector<1x1x128xf32>
    %46 = vector.broadcast %45 : vector<1x1x128xf32> to vector<2x8x128xf32>
    %47 = arith.addf %44, %46 : vector<2x8x128xf32>
    %48 = vector.extract_strided_slice %47 {offsets = [0, 0, 0], sizes = [2, 8, 4], strides = [1, 1, 1]} : vector<2x8x128xf32> to vector<2x8x4xf32>
    %c0_19 = arith.constant 0 : index
    %c0_20 = arith.constant 0 : index
    %c0_21 = arith.constant 0 : index
    %49 = vector.load %arg8[%c0_19, %c0_20, %c0_21] : memref<2x8x4xf32, #tpu.memory_space<vmem>>, vector<2x8x4xf32>
    tpu.vector_store %arg8[%c0_19, %c0_20, %c0_21], %48 {strides = array<i32>} : memref<2x8x4xf32, #tpu.memory_space<vmem>>, vector<2x8x4xf32>,
    return
  }
  func.func @transform_0(%arg0: i32) -> (i32, i32, i32) {
    %c0_i32 = arith.constant 0 : i32
    %c0_i32_0 = arith.constant 0 : i32
    %c0_i32_1 = arith.constant 0 : i32
    return %arg0, %c0_i32, %c0_i32_0 : i32, i32, i32
  }
  func.func @transform_1(%arg0: i32) -> (i32, i32) {
    %c0_i32 = arith.constant 0 : i32
    %c0_i32_0 = arith.constant 0 : i32
    %c0_i32_1 = arith.constant 0 : i32
    return %c0_i32, %c0_i32_0 : i32, i32
  }
  func.func @transform_2(%arg0: i32) -> (i32, i32) {
    %c0_i32 = arith.constant 0 : i32
    %c0_i32_0 = arith.constant 0 : i32
    %c0_i32_1 = arith.constant 0 : i32
    return %c0_i32, %c0_i32_0 : i32, i32
  }
  func.func @transform_3(%arg0: i32) -> (i32, i32) {
    %c0_i32 = arith.constant 0 : i32
    %c0_i32_0 = arith.constant 0 : i32
    %c0_i32_1 = arith.constant 0 : i32
    return %c0_i32, %c0_i32_0 : i32, i32
  }
  func.func @transform_4(%arg0: i32) -> (i32, i32) {
    %c0_i32 = arith.constant 0 : i32
    %c0_i32_0 = arith.constant 0 : i32
    %c0_i32_1 = arith.constant 0 : i32
    return %c0_i32, %c0_i32_0 : i32, i32
  }
  func.func @transform_5(%arg0: i32) -> (i32, i32) {
    %c0_i32 = arith.constant 0 : i32
    %c0_i32_0 = arith.constant 0 : i32
    %c0_i32_1 = arith.constant 0 : i32
    return %c0_i32, %c0_i32_0 : i32, i32
  }
  func.func @transform_6(%arg0: i32) -> (i32, i32) {
    %c0_i32 = arith.constant 0 : i32
    %c0_i32_0 = arith.constant 0 : i32
    %c0_i32_1 = arith.constant 0 : i32
    return %c0_i32, %c0_i32_0 : i32, i32
  }
  func.func @transform_7(%arg0: i32) -> (i32, i32, i32) {
    %c0_i32 = arith.constant 0 : i32
    %c0_i32_0 = arith.constant 0 : i32
    %c0_i32_1 = arith.constant 0 : i32
    return %arg0, %c0_i32, %c0_i32_0 : i32, i32, i32
  }
}

</mosaic_0001>

<bundles_post_ra>
// kernel: tpu_custom_call.1
= control target key start
LH: loop header
LB: loop body
LE: loop exit
PB: predicated region body
PF: predicated region fallthrough
CT: control target
= control target key end

     0   :  { %12 = vsyncpa [#allocation3], 0  ;;  %s683_s0 = inlined_call_operand.vmem [shape: f32[2,8,4], index: 0, kind: input, shape index: {}]   ;;  %s684_s1 = inlined_call_operand.vmem [shape: f32[4,256], index: 1, kind: input, shape index: {}]   ;;  %s685_s2 = inlined_call_operand.vmem [shape: f32[1,128], index: 2, kind: input, shape index: {}]   ;;  %s686_s3 = inlined_call_operand.hbm [shape: f32[128,256], index: 3, kind: input, shape index: {}]   ;;  %s687_s4 = inlined_call_operand.vmem [shape: f32[1,128], index: 4, kind: input, shape index: {}]   ;;  %s688_s5 = inlined_call_operand.hbm [shape: f32[128,256], index: 5, kind: input, shape index: {}]   ;;  %s689_s6 = inlined_call_operand.vmem [shape: f32[1,128], index: 6, kind: input, shape index: {}]   ;;  %s690_s7 = inlined_call_operand.vmem [shape: f32[2,8,4], index: 7, kind: output, shape index: {}]  }
   0x1   :  { %13 = vsyncpa [#allocation5], 0  ;;  %s580_s24 = smov [#allocation2]   ;;  %s532_s28 = scalar_lea.hbm %s686_s3, 4096 }
   0x2   :  { %s25_s25 = sshll.u32 %s580_s24, 4  ;;  %p533_p0 = scmp.ne.s32.totalorder %s686_s3, %s532_s28  ;;  %s26_s25 = int_to_ptr.vmem [resolvable:$true] %s25_s25 }
   0x3   :  { %p536_p1 = scmp.lt.u32.totalorder %s532_s28, %s686_s3 }
   0x5   :  { %p538_p2 = pnand %p536_p1, %p533_p0 }
   0x7   :  { %541 = shalt.err (!%p538_p2)
}
   0x8   :  { %s542_s10 = scalar_lea.vmem %s26_s25, 4096  ;;  %p547_p4 = scmp.lt.s32.totalorder %s26_s25, %s26_s25 }
   0x9   :  { %p543_p3 = scmp.ne.s32.totalorder %s26_s25, %s542_s10  ;;  %p548_p5 = scmp.lt.s32.totalorder %s542_s10, %s542_s10 }
   0xb   :  { %p549_p6 = por %p548_p5, %p547_p4 }
   0xd   :  { %p550_p7 = pnand %p549_p6, %p543_p3 }
   0xf   :  { %553 = shalt.err (!%p550_p7)
}
  0x10   :  { %s581_s11 = smov 256   ;;  %s582_s12 = smov 16  }
  0x11   :  { %31 = dma.hbm_to_vmem [thread:$0]  %s686_s3, 4096, %s26_s25, [#allocation3], %s581_s11, %s581_s11, %s582_s12  }
  0x12   :  { %s583_s15 = smov [#allocation4]   ;;  %s554_s19 = scalar_lea.hbm %s688_s5, 4096 }
  0x13   :  { %s39_s16 = sshll.u32 %s583_s15, 4  ;;  %p555_p8 = scmp.ne.s32.totalorder %s688_s5, %s554_s19  ;;  %s40_s16 = int_to_ptr.vmem [resolvable:$true] %s39_s16 }
  0x14   :  { %p558_p9 = scmp.lt.u32.totalorder %s554_s19, %s688_s5 }
  0x16   :  { %p560_p10 = pnand %p558_p9, %p555_p8 }
  0x18   :  { %563 = shalt.err (!%p560_p10)
}
  0x19   :  { %s564_s24 = scalar_lea.vmem %s40_s16, 4096  ;;  %p569_p12 = scmp.lt.s32.totalorder %s40_s16, %s40_s16 }
  0x1a   :  { %p565_p11 = scmp.ne.s32.totalorder %s40_s16, %s564_s24  ;;  %p570_p13 = scmp.lt.s32.totalorder %s564_s24, %s564_s24 }
  0x1c   :  { %p571_p0 = por %p570_p13, %p569_p12 }
  0x1e   :  { %p572_p1 = pnand %p571_p0, %p565_p11 }
  0x20   :  { %575 = shalt.err (!%p572_p1)
}
  0x21   :  { %45 = dma.hbm_to_vmem [thread:$0]  %s688_s5, 4096, %s40_s16, [#allocation5], %s581_s11, %s581_s11, %s582_s12  }
  0x22   :  { %576 = dma.done.wait [#allocation3], 4096  }
  0x23   :  { %577 = vsyncadd [#allocation3], 4294963200 }
  0x24   :  { %578 = dma.done.wait [#allocation5], 4096  }
  0x25   :  { %579 = vsyncadd [#allocation5], 4294963200  ;;  %v584_v0 = vmov 0.0   ;;  %v56_v1 = vld [vmem:[%s684_s1] sm:$0xff]  ;;  %vm67_vm0 = vcmask 1043456   ;;  %v174_v3 = vld [vmem:[#allocation2 + $0x8] sm:$0xff] }
  0x26   :  { %136 = vmatprep.mubr.f32.mxu0 %v584_v0  ;;  %270 = vmatprep.mubr.f32.mxu1 %v584_v0  ;;  %v59_v2 = vcombine.high %v56_v1, %v56_v1  ;;  %v176_v4 = vld [vmem:[#allocation2 + $0x18] sm:$0xff]  ;;  %v173_v5 = vld [vmem:[#allocation2] sm:$0xff]  ;;  %vm60_vm1 = vcmask 31744   ;;  %v175_v8 = vld [vmem:[#allocation2 + $0x10] sm:$0xff] }
  0x27   :  { %v54_v6 = vld [vmem:[%s683_s0] sm:$0xff]  ;;  %v454_v7 = vpack.c.bf16 %v176_v4, %v174_v3  ;;  %v456_v9 = vpack.c.bf16 %v175_v8, %v173_v5  ;;  %v55_v10 = vld [vmem:[%s683_s0 + $0x8] sm:$0xff]  ;;  %v180_v12 = vld [vmem:[#allocation2 + $0x38] sm:$0xff] }
  0x28   :  { %447 = vmatprep.subr.msk.mxu0 %vm67_vm0, %v59_v2  ;;  %v178_v11 = vld [vmem:[#allocation2 + $0x28] sm:$0xff]  ;;  %v177_v14 = vld [vmem:[#allocation2 + $0x20] sm:$0xff]  ;;  %v179_v15 = vld [vmem:[#allocation2 + $0x30] sm:$0xff] }
  0x29   :  { %448 = vmatpush1.msk.msra.mxu0 %vm67_vm0, %v56_v1  ;;  %455 = vmatprep.subr.bf16.mxu1 %v454_v7  ;;  %v458_v13 = vpack.c.bf16 %v180_v12, %v178_v11  ;;  %v460_v16 = vpack.c.bf16 %v179_v15, %v177_v14  ;;  %v182_v17 = vld [vmem:[#allocation2 + $0x48] sm:$0xff]  ;;  %v184_v18 = vld [vmem:[#allocation2 + $0x58] sm:$0xff]  ;;  %v181_v20 = vld [vmem:[#allocation2 + $0x40] sm:$0xff] }
  0x2a   :  { %449 = vmatmul.mubr.msk.f32.vlgmr.msra.gmra.mrb[0].mxu0 %vm60_vm1, %v54_v6  ;;  %457 = vmatpush1.bf16.msra.mxu1 %v456_v9  ;;  %v462_v19 = vpack.c.bf16 %v184_v18, %v182_v17  ;;  %v183_v21 = vld [vmem:[#allocation2 + $0x50] sm:$0xff]  ;;  %v186_v23 = vld [vmem:[#allocation2 + $0x68] sm:$0xff]  ;;  %v188_v24 = vld [vmem:[#allocation2 + $0x78] sm:$0xff] }
  0x2b   :  { %142 = vmatprep.mubr.f32.mxu0 %v584_v0  ;;  %459 = vmatprep.subr.bf16.mxu1 %v458_v13  ;;  %v464_v22 = vpack.c.bf16 %v183_v21, %v181_v20  ;;  %v466_v25 = vpack.c.bf16 %v188_v24, %v186_v23  ;;  %v185_v26 = vld [vmem:[#allocation2 + $0x60] sm:$0xff]  ;;  %v187_v27 = vld [vmem:[#allocation2 + $0x70] sm:$0xff]  ;;  %v190_v29 = vld [vmem:[#allocation2 + $0x88] sm:$0xff] }
  0x2c   :  { %v468_v28 = vpack.c.bf16 %v187_v27, %v185_v26  ;;  %v192_v30 = vld [vmem:[#allocation2 + $0x98] sm:$0xff]  ;;  %v189_v32 = vld [vmem:[#allocation2 + $0x80] sm:$0xff]  ;;  %v191_v33 = vld [vmem:[#allocation2 + $0x90] sm:$0xff] }
  0x2d   :  { %v470_v31 = vpack.c.bf16 %v192_v30, %v190_v29  ;;  %v472_v34 = vpack.c.bf16 %v191_v33, %v189_v32  ;;  %v194_v35 = vld [vmem:[#allocation2 + $0xa8] sm:$0xff]  ;;  %v196_v36 = vld [vmem:[#allocation2 + $0xb8] sm:$0xff]  ;;  %v193_v38 = vld [vmem:[#allocation2 + $0xa0] sm:$0xff] }
  0x2e   :  { %450 = vmatmul.mubr.msk.f32.gmra.mrb[2].mxu0 %vm60_vm1, %v55_v10  ;;  %461 = vmatpush1.bf16.msra.mxu1 %v460_v16  ;;  %v474_v37 = vpack.c.bf16 %v196_v36, %v194_v35  ;;  %v195_v39 = vld [vmem:[#allocation2 + $0xb0] sm:$0xff]  ;;  %v198_v41 = vld [vmem:[#allocation2 + $0xc8] sm:$0xff]  ;;  %v200_v42 = vld [vmem:[#allocation2 + $0xd8] sm:$0xff] }
  0x2f   :  { %404 = vmatprep.mubr.f32.mxu0 %v584_v0  ;;  %463 = vmatprep.subr.bf16.mxu1 %v462_v19  ;;  %v476_v40 = vpack.c.bf16 %v195_v39, %v193_v38  ;;  %v478_v43 = vpack.c.bf16 %v200_v42, %v198_v41  ;;  %v197_v44 = vld [vmem:[#allocation2 + $0xc0] sm:$0xff]  ;;  %v199_v45 = vld [vmem:[#allocation2 + $0xd0] sm:$0xff]  ;;  %v202_v47 = vld [vmem:[#allocation2 + $0xe8] sm:$0xff] }
  0x30   :  { %v480_v46 = vpack.c.bf16 %v199_v45, %v197_v44  ;;  %v204_v48 = vld [vmem:[#allocation2 + $0xf8] sm:$0xff]  ;;  %v201_v49 = vld [vmem:[#allocation2 + $0xe0] sm:$0xff]  ;;  %v203_v51 = vld [vmem:[#allocation2 + $0xf0] sm:$0xff] }
  0x31   :  { %v482_v50 = vpack.c.bf16 %v204_v48, %v202_v47  ;;  %v484_v52 = vpack.c.bf16 %v203_v51, %v201_v49  ;;  %v308_v53 = vld [vmem:[#allocation4 + $0x8] sm:$0xff]  ;;  %v310_v54 = vld [vmem:[#allocation4 + $0x18] sm:$0xff]  ;;  %v307_v55 = vld [vmem:[#allocation4] sm:$0xff] }
  0x32   :  { %465 = vmatpush1.bf16.msra.mxu1 %v464_v22  ;;  %v486_v56 = vpack.c.bf16 %v310_v54, %v308_v53  ;;  %v309_v57 = vld [vmem:[#allocation4 + $0x10] sm:$0xff]  ;;  %v451_v10 = vld [vmem:[%s685_s2] ss:$0 sm:$0xff]  ;;  %v312_v19 = vld [vmem:[#allocation4 + $0x28] sm:$0xff] }
  0x33   :  { %467 = vmatprep.subr.bf16.mxu1 %v466_v25  ;;  %v488_v58 = vpack.c.bf16 %v309_v57, %v307_v55  ;;  %v314_v20 = vld [vmem:[#allocation4 + $0x38] sm:$0xff]  ;;  %v311_v22 = vld [vmem:[#allocation4 + $0x20] sm:$0xff]  ;;  %v313_v23 = vld [vmem:[#allocation4 + $0x30] sm:$0xff] }
  0x34   :  { %487 = vmatprep.subr.bf16.mxu0 %v486_v56  ;;  %v490_v21 = vpack.c.bf16 %v314_v20, %v312_v19  ;;  %v492_v24 = vpack.c.bf16 %v313_v23, %v311_v22  ;;  %v316_v25 = vld [vmem:[#allocation4 + $0x48] sm:$0xff]  ;;  %v318_v26 = vld [vmem:[#allocation4 + $0x58] sm:$0xff]  ;;  %v317_v29 = vld [vmem:[#allocation4 + $0x50] sm:$0xff] }
  0x35   :  { %489 = vmatpush1.bf16.msra.mxu0 %v488_v58  ;;  %v494_v27 = vpack.c.bf16 %v318_v26, %v316_v25  ;;  %v322_v32 = vld [vmem:[#allocation4 + $0x78] sm:$0xff]  ;;  %v321_v35 = vld [vmem:[#allocation4 + $0x70] sm:$0xff]  ;;  %v332_v49 = vld [vmem:[#allocation4 + $0xc8] sm:$0xff] }
  0x36   :  { %469 = vmatpush1.bf16.msra.mxu1 %v468_v28  ;;  %491 = vmatprep.subr.bf16.mxu0 %v490_v21  ;;  %v315_v28 = vld [vmem:[#allocation4 + $0x40] sm:$0xff]  ;;  %v326_v38 = vld [vmem:[#allocation4 + $0x98] sm:$0xff]  ;;  %v325_v41 = vld [vmem:[#allocation4 + $0x90] sm:$0xff] }
  0x37   :  { %471 = vmatprep.subr.bf16.mxu1 %v470_v31  ;;  %v496_v30 = vpack.c.bf16 %v317_v29, %v315_v28  ;;  %v320_v31 = vld [vmem:[#allocation4 + $0x68] sm:$0xff]  ;;  %v330_v44 = vld [vmem:[#allocation4 + $0xb8] sm:$0xff]  ;;  %v329_v47 = vld [vmem:[#allocation4 + $0xb0] sm:$0xff] }
  0x38   :  { %v498_v33 = vpack.c.bf16 %v322_v32, %v320_v31  ;;  %v333_v53 = vld [vmem:[#allocation4 + $0xd0] sm:$0xff]  ;;  %v336_v55 = vld [vmem:[#allocation4 + $0xe8] sm:$0xff]  ;;  %v338_v56 = vld [vmem:[#allocation4 + $0xf8] sm:$0xff] }
  0x39   :  { %493 = vmatpush1.bf16.msra.mxu0 %v492_v24  ;;  %v335_v57 = vld [vmem:[#allocation4 + $0xe0] sm:$0xff]  ;;  %v514_v58 = vpack.c.bf16 %v338_v56, %v336_v55 }
  0x3a   :  { %473 = vmatpush1.bf16.msra.mxu1 %v472_v34  ;;  %495 = vmatprep.subr.bf16.mxu0 %v494_v27  ;;  %v319_v34 = vld [vmem:[#allocation4 + $0x60] sm:$0xff] }
  0x3b   :  { %475 = vmatprep.subr.bf16.mxu1 %v474_v37  ;;  %v500_v36 = vpack.c.bf16 %v321_v35, %v319_v34  ;;  %v324_v37 = vld [vmem:[#allocation4 + $0x88] sm:$0xff] }
  0x3c   :  { %v502_v39 = vpack.c.bf16 %v326_v38, %v324_v37 }
  0x3d   :  { %497 = vmatpush1.bf16.msra.mxu0 %v496_v30 }
  0x3e   :  { %477 = vmatpush1.bf16.msra.mxu1 %v476_v40  ;;  %499 = vmatprep.subr.bf16.mxu0 %v498_v33  ;;  %v323_v40 = vld [vmem:[#allocation4 + $0x80] sm:$0xff] }
  0x3f   :  { %479 = vmatprep.subr.bf16.mxu1 %v478_v43  ;;  %v504_v42 = vpack.c.bf16 %v325_v41, %v323_v40  ;;  %v328_v43 = vld [vmem:[#allocation4 + $0xa8] sm:$0xff] }
  0x40   :  { %v506_v45 = vpack.c.bf16 %v330_v44, %v328_v43 }
  0x41   :  { %501 = vmatpush1.bf16.msra.mxu0 %v500_v36 }
  0x42   :  { %481 = vmatpush1.bf16.msra.mxu1 %v480_v46  ;;  %503 = vmatprep.subr.bf16.mxu0 %v502_v39  ;;  %v327_v46 = vld [vmem:[#allocation4 + $0xa0] sm:$0xff] }
  0x43   :  { %483 = vmatprep.subr.bf16.mxu1 %v482_v50  ;;  %v508_v48 = vpack.c.bf16 %v329_v47, %v327_v46  ;;  %v334_v50 = vld [vmem:[#allocation4 + $0xd8] sm:$0xff] }
  0x44   :  { %v510_v51 = vpack.c.bf16 %v334_v50, %v332_v49 }
  0x45   :  { %505 = vmatpush1.bf16.msra.mxu0 %v504_v42 }
  0x46   :  { %485 = vmatpush1.bf16.msra.mxu1 %v484_v52  ;;  %507 = vmatprep.subr.bf16.mxu0 %v506_v45  ;;  %v331_v52 = vld [vmem:[#allocation4 + $0xc0] sm:$0xff] }
  0x47   :  { %v512_v54 = vpack.c.bf16 %v333_v53, %v331_v52 }
  0x49   :  { %509 = vmatpush1.bf16.msra.mxu0 %v508_v48 }
  0x4a   :  { %511 = vmatprep.subr.bf16.mxu0 %v510_v51 }
  0x4d   :  { %513 = vmatpush1.bf16.msra.mxu0 %v512_v54 }
  0x4e   :  { %515 = vmatprep.subr.bf16.mxu0 %v514_v58 }
  0xfd   :  { %v138_v59 = vpop.f32.mrb[0].mxu0 }
  0xfe   :  { %v140_v60 = vpop.f32.mrb[1].mxu0 }
  0xff   :  { %v149_v61 = vrot.slane %v140_v60, 4 }
 0x101   :  { %v150_v62 = vadd.f32 %v149_v61, %v140_v60  ;;  %v144_v63 = vpop.f32.mrb[2].mxu0 }
 0x102   :  { %v146_v1 = vpop.f32.mrb[3].mxu0 }
 0x103   :  { %v151_v2 = vrot.slane %v150_v62, 2  ;;  %v155_v3 = vrot.slane %v146_v1, 4 }
 0x105   :  { %v152_v4 = vadd.f32 %v151_v2, %v150_v62  ;;  %v156_v5 = vadd.f32 %v155_v3, %v146_v1 }
 0x107   :  { %v153_v6 = vrot.slane %v152_v4, 1  ;;  %v157_v7 = vrot.slane %v156_v5, 2 }
 0x109   :  { %v154_v8 = vadd.f32 %v153_v6, %v152_v4  ;;  %v158_v9 = vadd.f32 %v157_v7, %v156_v5 }
 0x10b   :  { %v161_v11 = vadd.f32 %v154_v8, %v138_v59  ;;  %v159_v12 = vrot.slane %v158_v9, 1  ;;  %v337_v59 = vld [vmem:[#allocation4 + $0xf0] sm:$0xff] }
 0x10c   :  { %v516_v60 = vpack.c.bf16 %v337_v59, %v335_v57 }
 0x10d   :  { %v169_v13 = vadd.f32 %v451_v10, %v161_v11  ;;  %v160_v14 = vadd.f32 %v159_v12, %v158_v9  ;;  %v452_v12 = vld [vmem:[%s687_s4] ss:$0 sm:$0xff] }
 0x10e   :  { %517 = vmatpush1.bf16.msra.mxu0 %v516_v60 }
 0x10f   :  { %524 = vtanh.f32 %v169_v13  ;;  %v162_v15 = vadd.f32 %v160_v14, %v144_v63 }
 0x111   :  { %v170_v16 = vadd.f32 %v451_v10, %v162_v15 }
 0x113   :  { %526 = vtanh.f32 %v170_v16 }
 0x119   :  { %v525_v17 = vpop.eup %524 }
 0x11a   :  { %271 = vmatmul.mubr.f32.vlgmr.msra.gmra.mrb[0].mxu1 %v525_v17 }
 0x11b   :  { %276 = vmatprep.mubr.f32.mxu1 %v584_v0 }
 0x11d   :  { %v527_v18 = vpop.eup %526 }
 0x11e   :  { %277 = vmatmul.mubr.f32.gmra.mrb[2].mxu1 %v527_v18 }
 0x1ed   :  { %v272_v61 = vpop.f32.mrb[0].mxu1 }
 0x1ee   :  { %v274_v62 = vpop.f32.mrb[1].mxu1 }
 0x1ef   :  { %v283_v63 = vrot.slane %v274_v62, 4 }
 0x1f1   :  { %v284_v1 = vadd.f32 %v283_v63, %v274_v62  ;;  %v278_v2 = vpop.f32.mrb[2].mxu1 }
 0x1f2   :  { %v280_v3 = vpop.f32.mrb[3].mxu1 }
 0x1f3   :  { %v285_v4 = vrot.slane %v284_v1, 2  ;;  %v289_v5 = vrot.slane %v280_v3, 4 }
 0x1f5   :  { %v286_v6 = vadd.f32 %v285_v4, %v284_v1  ;;  %v290_v7 = vadd.f32 %v289_v5, %v280_v3 }
 0x1f7   :  { %v287_v8 = vrot.slane %v286_v6, 1  ;;  %v291_v9 = vrot.slane %v290_v7, 2 }
 0x1f9   :  { %v288_v10 = vadd.f32 %v287_v8, %v286_v6  ;;  %v292_v11 = vadd.f32 %v291_v9, %v290_v7 }
 0x1fb   :  { %v295_v13 = vadd.f32 %v288_v10, %v272_v61  ;;  %v293_v14 = vrot.slane %v292_v11, 1 }
 0x1fd   :  { %v294_v15 = vadd.f32 %v293_v14, %v292_v11  ;;  %v303_v16 = vadd.f32 %v452_v12, %v295_v13 }
 0x1ff   :  { %v296_v17 = vadd.f32 %v294_v15, %v278_v2  ;;  %528 = vtanh.f32 %v303_v16 }
 0x201   :  { %v304_v18 = vadd.f32 %v452_v12, %v296_v17 }
 0x203   :  { %530 = vtanh.f32 %v304_v18 }
 0x209   :  { %v529_v19 = vpop.eup %528 }
 0x20a   :  { %405 = vmatmul.mubr.f32.vlgmr.msra.gmra.mrb[4].mxu0 %v529_v19 }
 0x20b   :  { %410 = vmatprep.mubr.f32.mxu0 %v584_v0  ;;  %v453_v0 = vld [vmem:[%s689_s6] ss:$0 sm:$0xff] }
 0x20d   :  { %v531_v20 = vpop.eup %530 }
 0x20e   :  { %411 = vmatmul.mubr.f32.gmra.mrb[6].mxu0 %v531_v20 }
 0x2dd   :  { %v406_v21 = vpop.f32.mrb[4].mxu0 }
 0x2de   :  { %v408_v22 = vpop.f32.mrb[5].mxu0 }
 0x2df   :  { %v417_v23 = vrot.slane %v408_v22, 4 }
 0x2e1   :  { %v418_v24 = vadd.f32 %v417_v23, %v408_v22  ;;  %v412_v25 = vpop.f32.mrb[6].mxu0 }
 0x2e2   :  { %v414_v26 = vpop.f32.mrb[7].mxu0 }
 0x2e3   :  { %v419_v27 = vrot.slane %v418_v24, 2  ;;  %v423_v28 = vrot.slane %v414_v26, 4 }
 0x2e5   :  { %v420_v29 = vadd.f32 %v419_v27, %v418_v24  ;;  %v424_v30 = vadd.f32 %v423_v28, %v414_v26 }
 0x2e7   :  { %v421_v31 = vrot.slane %v420_v29, 1  ;;  %v425_v32 = vrot.slane %v424_v30, 2 }
 0x2e9   :  { %v422_v33 = vadd.f32 %v421_v31, %v420_v29  ;;  %v426_v34 = vadd.f32 %v425_v32, %v424_v30 }
 0x2eb   :  { %v429_v35 = vadd.f32 %v422_v33, %v406_v21  ;;  %v427_v36 = vrot.slane %v426_v34, 1 }
 0x2ed   :  { %v428_v37 = vadd.f32 %v427_v36, %v426_v34  ;;  %v437_v38 = vadd.f32 %v453_v0, %v429_v35 }
 0x2ef   :  { %v430_v39 = vadd.f32 %v428_v37, %v412_v25  ;;  %439 = vst.msk [vmem:[%s690_s7] sm:$0xff] %vm60_vm1, %v437_v38 }
 0x2f1   :  { %v438_v40 = vadd.f32 %v453_v0, %v430_v39 }
 0x2f3   :  { %440 = vst.msk [vmem:[%s690_s7 + $0x8] sm:$0xff] %vm60_vm1, %v438_v40 }
 0x2f4   :  { %445 = vsyncpa [#allocation3], 1 }
 0x2f5   :  { %446 = vsyncpa [#allocation5], 1 }

</bundles_post_ra>
